<compile_context>
chip_gen: v7x
topology: tpu7x:2x2x1
jax: 0.10.0
libtpu: 0.0.40
codegen_flags: <defaults>
</compile_context>

<pallas_src>
import functools

import jax
import jax.numpy as jnp
from jax.experimental import pallas as pl
from jax.experimental.pallas import tpu as pltpu


def _round_up(x, m):
    return ((x + m - 1) // m) * m


def _choose_tile_rows(n_rows, desired=256, min_tile=8):
    """Row-tile heuristic: big enough to fill the MXU M-dim, but keep >=2 grid steps
    when the batch allows it (feeds both v7x TensorCores / hides pipeline overhead).
    Always a multiple of 8 (sublane granularity)."""
    half = _round_up(max(min_tile, -(-n_rows // 2)), min_tile)
    return max(min_tile, min(_round_up(desired, min_tile), half))


def _mlp_fused_kernel(x_ref, *refs):
    """Runs the whole MLP on one row tile.

    refs = (w_0, b_0, w_1, b_1, ..., out_ref). Weights already have eval-mode
    BatchNorm folded in and may be bf16 (MXU fast path); biases are f32.
    """
    out_ref = refs[-1]
    prm = refs[:-1]
    n_layers = len(prm) // 2

    h = x_ref[...].astype(jnp.float32)                    # (TB, F0)
    for l in range(n_layers):
        w = prm[2 * l][...]                               # (F_in, F_out) f32 or bf16
        b = prm[2 * l + 1][...]                           # (1, F_out)    f32
        # Cast only the (small) activation tile to the weight dtype; f32 accumulate.
        h = jnp.dot(h.astype(w.dtype), w, preferred_element_type=jnp.float32) + b
        if l < n_layers - 1:                              # final ReLU dropped by `[:-1]`
            h = jnp.maximum(h, 0.0)
    out_ref[...] = h.astype(out_ref.dtype)


def mlp_forward(x, folded_params, *, tile_rows=None, out_dtype=jnp.float32,
                vmem_budget_bytes=24 << 20):
    """Fused multi-layer forward.

    folded_params = [(W_eff (Fin,Fout)  [f32 or bf16], b_eff (1,Fout) f32), ...]
    """
    n_rows, f0 = x.shape
    f_last = folded_params[-1][0].shape[1]

    param_bytes = sum(w.size * w.dtype.itemsize + b.size * b.dtype.itemsize
                      for (w, b) in folded_params)
    widest = max([f0] + [w.shape[1] for (w, _) in folded_params])

    if tile_rows is None:
        tile_rows = _choose_tile_rows(n_rows)

    # VMEM working-set estimate: double-buffered in/out row tiles + widest
    # intermediate + single-buffered parameters. Shrink the tile if it would
    # blow the (generation-dependent) budget.
    def _working_set(t):
        act = 2 * t * (f0 + f_last) * 4            # pipelined input/output tiles
        live = 2 * t * widest * 4                  # widest live intermediate
        return act + live + param_bytes

    while tile_rows > 8 and _working_set(tile_rows) > vmem_budget_bytes:
        tile_rows //= 2
    tile_rows = max(8, _round_up(tile_rows, 8))

    padded = _round_up(n_rows, tile_rows)
    if padded != n_rows:                           # remainder path: pad, slice off later
        x = jnp.pad(x, ((0, padded - n_rows), (0, 0)))
    grid = (padded // tile_rows,)

    in_specs = [pl.BlockSpec((tile_rows, f0), lambda i: (i, 0))]
    flat_params = []
    flops = 0
    for (w, b) in folded_params:
        fin, fout = w.shape
        flat_params += [w, b]
        # Broadcast parameters: constant index_map -> single-buffer (Buffered(1));
        # double-buffering a block that never changes only doubles VMEM use.
        in_specs += [
            pl.BlockSpec((fin, fout), lambda i: (0, 0), pipeline_mode=pl.Buffered(1)),
            pl.BlockSpec((1, fout), lambda i: (0, 0), pipeline_mode=pl.Buffered(1)),
        ]
        flops += 2 * padded * fin * fout

    bytes_accessed = (x.size * x.dtype.itemsize
                      + padded * f_last * jnp.dtype(out_dtype).itemsize
                      + param_bytes)
    # Raise the scoped-VMEM limit when needed; keep below v7x's 64 MiB physical VMEM.
    vmem_limit = int(min(max(2 * _working_set(tile_rows), 16 << 20), 48 << 20))

    kernel = pl.pallas_call(
        _mlp_fused_kernel,
        out_shape=jax.ShapeDtypeStruct((padded, f_last), out_dtype),
        grid=grid,
        in_specs=in_specs,
        out_specs=pl.BlockSpec((tile_rows, f_last), lambda i: (i, 0)),
        compiler_params=pltpu.CompilerParams(
            dimension_semantics=("parallel",),
            vmem_limit_bytes=vmem_limit),
        cost_estimate=pl.CostEstimate(
            flops=flops, transcendentals=0, bytes_accessed=bytes_accessed),
    )
    out = kernel(x, *flat_params)
    return out[:n_rows] if padded != n_rows else out


def init_mlp_params(key, sizes, batch_norm=True):
    """PyTorch-style init: Linear(W, b) + fresh BatchNorm1d params/stats per layer."""
    params = []
    for s in range(len(sizes) - 1):
        key, kw, kb, kg, kbe, km, kv = jax.random.split(key, 7)
        fin, fout = sizes[s], sizes[s + 1]
        bound = 1.0 / (fin ** 0.5)
        w = jax.random.uniform(kw, (fin, fout), jnp.float32, -bound, bound)
        b = jax.random.uniform(kb, (fout,), jnp.float32, -bound, bound)
        if batch_norm:
            gamma = 1.0 + 0.1 * jax.random.normal(kg, (fout,), jnp.float32)
            beta = 0.1 * jax.random.normal(kbe, (fout,), jnp.float32)
            mean = 0.1 * jax.random.normal(km, (fout,), jnp.float32)
            var = jnp.abs(jax.random.normal(kv, (fout,), jnp.float32)) + 0.5
            bn = (gamma, beta, mean, var)
        else:
            bn = None
        params.append((w, b, bn))
    return params


def fold_bn_into_linear(params, eps=1e-5, weight_dtype=jnp.bfloat16):
    """Exact eval-mode fold: BN(x @ W + b) == x @ W_eff + b_eff (done once, outside jit).

    W_eff is cast to `weight_dtype` (bf16 default: native MXU fast path on v6e/v7x
    and half the weight DMA); biases stay f32 since they add into the f32 accumulator.
    """
    folded = []
    for (w, b, bn) in params:
        if bn is None:
            w_eff, b_eff = w, b
        else:
            gamma, beta, mean, var = bn
            a = gamma * jax.lax.rsqrt(var + eps)
            w_eff = w * a[None, :]
            b_eff = (b - mean) * a + beta
        folded.append((w_eff.astype(weight_dtype),
                       b_eff.reshape(1, -1).astype(jnp.float32)))
    return folded


if __name__ == "__main__":
    # Small, lane-dense shapes consistent with the module (e.g. MLP([128, 256, 128])).
    sizes = [128, 256, 128]
    batch = 32

    key = jax.random.PRNGKey(0)
    k_x, k_p = jax.random.split(key)
    x = jax.random.normal(k_x, (batch, sizes[0]), jnp.float32)
    params = init_mlp_params(k_p, sizes, batch_norm=True)

    # Pure-JAX reference (unfolded BN, f32) == the PyTorch eval-mode forward.
    h = x
    for i, (w, b, bn) in enumerate(params):
        h = h @ w + b
        if bn is not None:
            gamma, beta, mean, var = bn
            h = (h - mean) * jax.lax.rsqrt(var + 1e-5) * gamma + beta
        if i < len(params) - 1:
            h = jnp.maximum(h, 0.0)
    ref = h

    fwd = jax.jit(mlp_forward)

    # 1) Exact-fidelity path (f32 MXU operands): tight check against the reference.
    out_f32 = fwd(x, fold_bn_into_linear(params, weight_dtype=jnp.float32))
    jax.block_until_ready(out_f32)
    assert out_f32.shape == (batch, sizes[-1]), out_f32.shape
    assert jnp.allclose(out_f32, ref, atol=1e-3, rtol=1e-3), \
        float(jnp.max(jnp.abs(out_f32 - ref)))

    # 2) Fast path (bf16 MXU operands, f32 accumulation): the recommended default.
    out_bf16 = fwd(x, fold_bn_into_linear(params))
    jax.block_until_ready(out_bf16)
    err = float(jnp.max(jnp.abs(out_bf16.astype(jnp.float32) - ref)))
    scale = float(jnp.max(jnp.abs(ref))) + 1e-6
    assert err <= 3e-2 * scale, (err, scale)

    print("KERNEL_OK")
</pallas_src>

<mosaic_0001>
module attributes {stable_mosaic.version = 11 : i64} {
  func.func @_mlp_fused_kernel(%arg0: i32, %arg1: memref<16x128xf32, #tpu.memory_space<vmem>>, %arg2: memref<128x256xf32, #tpu.memory_space<vmem>>, %arg3: memref<1x256xf32, #tpu.memory_space<vmem>>, %arg4: memref<256x128xf32, #tpu.memory_space<vmem>>, %arg5: memref<1x128xf32, #tpu.memory_space<vmem>>, %arg6: memref<16x128xf32, #tpu.memory_space<vmem>>) attributes {dimension_semantics = [#tpu.dimension_semantics<parallel>], iteration_bounds = array<i64: 2>, scalar_prefetch = 0 : i64, scratch_operands = 0 : i64, tpu.core_type = #tpu.core_type<tc>, window_params = [{transform_indices = @transform_0, window_bounds = array<i64: 16, 128>}, {pipeline_mode = #tpu.pipeline_mode<synchronous>, transform_indices = @transform_1, window_bounds = array<i64: 128, 256>}, {pipeline_mode = #tpu.pipeline_mode<synchronous>, transform_indices = @transform_2, window_bounds = array<i64: 1, 256>}, {pipeline_mode = #tpu.pipeline_mode<synchronous>, transform_indices = @transform_3, window_bounds = array<i64: 256, 128>}, {pipeline_mode = #tpu.pipeline_mode<synchronous>, transform_indices = @transform_4, window_bounds = array<i64: 1, 128>}, {transform_indices = @transform_5, window_bounds = array<i64: 16, 128>}]} {
    %c0 = arith.constant 0 : index
    %c0_0 = arith.constant 0 : index
    %0 = vector.load %arg1[%c0, %c0_0] : memref<16x128xf32, #tpu.memory_space<vmem>>, vector<16x128xf32>
    %c0_1 = arith.constant 0 : index
    %c0_2 = arith.constant 0 : index
    %1 = vector.load %arg2[%c0_1, %c0_2] : memref<128x256xf32, #tpu.memory_space<vmem>>, vector<128x256xf32>
    %c0_3 = arith.constant 0 : index
    %c0_4 = arith.constant 0 : index
    %2 = vector.load %arg3[%c0_3, %c0_4] : memref<1x256xf32, #tpu.memory_space<vmem>>, vector<1x256xf32>
    %cst = arith.constant dense<0.000000e+00> : vector<16x256xf32>
    %3 = tpu.matmul %0, %1, %cst {dimension_numbers = #tpu.dot_dimension_numbers<[1], [0], [0], [1], [0, 0, 1, 1], [], []>} : vector<16x128xf32>, vector<128x256xf32>, vector<16x256xf32> -> vector<16x256xf32>
    %4 = vector.broadcast %2 : vector<1x256xf32> to vector<16x256xf32>
    %5 = arith.addf %3, %4 : vector<16x256xf32>
    %cst_5 = arith.constant 0.000000e+00 : f32
    %6 = vector.broadcast %cst_5 : f32 to vector<16x256xf32>
    %7 = arith.maximumf %5, %6 : vector<16x256xf32>
    %c0_6 = arith.constant 0 : index
    %c0_7 = arith.constant 0 : index
    %8 = vector.load %arg4[%c0_6, %c0_7] : memref<256x128xf32, #tpu.memory_space<vmem>>, vector<256x128xf32>
    %c0_8 = arith.constant 0 : index
    %c0_9 = arith.constant 0 : index
    %9 = vector.load %arg5[%c0_8, %c0_9] : memref<1x128xf32, #tpu.memory_space<vmem>>, vector<1x128xf32>
    %cst_10 = arith.constant dense<0.000000e+00> : vector<16x128xf32>
    %10 = tpu.matmul %7, %8, %cst_10 {dimension_numbers = #tpu.dot_dimension_numbers<[1], [0], [0], [1], [0, 0, 1, 1], [], []>} : vector<16x256xf32>, vector<256x128xf32>, vector<16x128xf32> -> vector<16x128xf32>
    %11 = vector.broadcast %9 : vector<1x128xf32> to vector<16x128xf32>
    %12 = arith.addf %10, %11 : vector<16x128xf32>
    %c0_11 = arith.constant 0 : index
    %c0_12 = arith.constant 0 : index
    %13 = vector.load %arg6[%c0_11, %c0_12] : memref<16x128xf32, #tpu.memory_space<vmem>>, vector<16x128xf32>
    tpu.vector_store %arg6[%c0_11, %c0_12], %12 {strides = array<i32>} : memref<16x128xf32, #tpu.memory_space<vmem>>, vector<16x128xf32>,
    return
  }
  func.func @transform_0(%arg0: i32) -> (i32, i32) {
    %c0_i32 = arith.constant 0 : i32
    %c0_i32_0 = arith.constant 0 : i32
    return %arg0, %c0_i32 : i32, i32
  }
  func.func @transform_1(%arg0: i32) -> (i32, i32) {
    %c0_i32 = arith.constant 0 : i32
    %c0_i32_0 = arith.constant 0 : i32
    %c0_i32_1 = arith.constant 0 : i32
    return %c0_i32, %c0_i32_0 : i32, i32
  }
  func.func @transform_2(%arg0: i32) -> (i32, i32) {
    %c0_i32 = arith.constant 0 : i32
    %c0_i32_0 = arith.constant 0 : i32
    %c0_i32_1 = arith.constant 0 : i32
    return %c0_i32, %c0_i32_0 : i32, i32
  }
  func.func @transform_3(%arg0: i32) -> (i32, i32) {
    %c0_i32 = arith.constant 0 : i32
    %c0_i32_0 = arith.constant 0 : i32
    %c0_i32_1 = arith.constant 0 : i32
    return %c0_i32, %c0_i32_0 : i32, i32
  }
  func.func @transform_4(%arg0: i32) -> (i32, i32) {
    %c0_i32 = arith.constant 0 : i32
    %c0_i32_0 = arith.constant 0 : i32
    %c0_i32_1 = arith.constant 0 : i32
    return %c0_i32, %c0_i32_0 : i32, i32
  }
  func.func @transform_5(%arg0: i32) -> (i32, i32) {
    %c0_i32 = arith.constant 0 : i32
    %c0_i32_0 = arith.constant 0 : i32
    return %arg0, %c0_i32 : i32, i32
  }
}

</mosaic_0001>

<bundles_post_ra>
// kernel: mlp_forward.1
= control target key start
LH: loop header
LB: loop body
LE: loop exit
PB: predicated region body
PF: predicated region fallthrough
CT: control target
= control target key end

     0   :  { %10 = vsyncpa [#allocation3], 0  ;;  %s1275_s0 = inlined_call_operand.hbm [shape: f32[32,128], index: 0, kind: input, shape index: {}]   ;;  %s1276_s1 = inlined_call_operand.hbm [shape: f32[128,256], index: 1, kind: input, shape index: {}]   ;;  %s1277_s2 = inlined_call_operand.vmem [shape: f32[1,256], index: 2, kind: input, shape index: {}]   ;;  %s1278_s3 = inlined_call_operand.hbm [shape: f32[256,128], index: 3, kind: input, shape index: {}]   ;;  %s1279_s4 = inlined_call_operand.vmem [shape: f32[1,128], index: 4, kind: input, shape index: {}]   ;;  %s1280_s5 = inlined_call_operand.hbm [shape: f32[32,128], index: 5, kind: output, shape index: {}]  }
   0x1   :  { %12 = vsyncpa [#allocation3 + $0x1], 0 }
   0x2   :  { %13 = vsyncpa [#allocation6], 0 }
   0x3   :  { %14 = vsyncpa [#allocation4], 0 }
   0x4   :  { %16 = vsyncpa [#allocation4 + $0x1], 0  ;;  %s1019_s18 = smov 0   ;;  %s1021_s19 = smov 0  }
   0x5   :  { %s1023_s20 = smov 0   ;;  %s1025_s21 = smov 0  }
   0x6 LB: > { %s1040_s22 = sadd.s32 4294967295, %s976_s21   ;;  %s623_s23 = sadd.s32 4294967294, %s976_s21   ;;  %s976_s21 = sphi %s1025_s21, %s1300_s21   ;;  %s972_s20 = sphi %s1023_s20, %s1299_s20   ;;  %s968_s19 = sphi %s1021_s19, %s1298_s19   ;;  %s964_s18 = sphi %s1019_s18, %s1297_s18  }
   0x7   : > { %p42_p0 = scmp.ne.s32.totalorder %s968_s19, %s964_s18  ;;  %p1281_p1 = scmp.eq.s32.totalorder %s1040_s22, 0 }
   0x8   : > { %p156_p3 = scmp.eq.s32.totalorder %s623_s23, 1  ;;  %p624_p5 = scmp.ge.s32.totalorder %s976_s21, 1 }
   0x9   : > { %p1049_p4 = por %p1281_p1, %p42_p0  ;;  %p163_p7 = scmp.lt.s32.totalorder %s976_s21, 3 }
   0xa   : > { %p1054_p6 = por %p156_p3, %p42_p0  ;;  %s978_s27 = smov [#allocation5]  }
   0xb   : > { %s1284_s24 = scalar_select %p1049_p4, 1, 0 }
   0xc   : > { %s1285_s25 = scalar_select %p1054_p6, 1, 0 }
   0xd   : > { %p1059_p8 = pnand %p624_p5, %p163_p7  ;;  %s175_s28 = sshll.u32 %s978_s27, 4  ;;  %s1063_s28 = int_to_ptr.vmem [resolvable:$true] %s175_s28 }
   0xe   : > { %s979_s30 = smov [#allocation7]   ;;  %s820_s9 = scalar_lea.hbm %s1276_s1, 4096 }
   0xf   : > { %p758_p9 = pneg %p1059_p8  ;;  %s191_s6 = sshll.u32 %s979_s30, 4  ;;  %s1074_s6 = int_to_ptr.vmem [resolvable:$true] %s191_s6 }
  0x10   : > { %p821_p12 = scmp.ne.s32.totalorder %s1276_s1, %s820_s9  ;;  %p827_p5 = scmp.lt.u32.totalorder %s820_s9, %s1276_s1 }
  0x11   : > { %p1070_p11 = pnand %p758_p9, %p1281_p1 }
  0x13   : > { %p822_p13 = pneg %p1070_p11 }
  0x15   : > { %p823_p0 = pnand %p822_p13, %p821_p12 }
  0x17   : > { %p824_p3 = pneg %p823_p0 }
  0x19   : > { %p829_p7 = pnand %p827_p5, %p824_p3 }
  0x1b   : > { %832 = shalt.err (!%p829_p7)
}
  0x1c   : > { %s833_s14 = scalar_lea.vmem %s1063_s28, 4096  ;;  %p841_p2 = scmp.lt.s32.totalorder %s1063_s28, %s1063_s28 }
  0x1d   : > { %p834_p9 = scmp.ne.s32.totalorder %s1063_s28, %s833_s14  ;;  %p842_p12 = scmp.lt.s32.totalorder %s833_s14, %s833_s14 }
  0x1f   : > { %p836_p10 = pnand %p834_p9, %p822_p13  ;;  %p843_p0 = por %p842_p12, %p841_p2 }
  0x21   : > { %p837_p1 = pneg %p836_p10 }
  0x23   : > { %p844_p6 = pnand %p843_p0, %p837_p1 }
  0x25   : > { %847 = shalt.err (!%p844_p6)
}
  0x26   : > { %s980_s15 = smov 256   ;;  %s981_s16 = smov 16  }
  0x27   : > { %761 = dma.hbm_to_vmem [thread:$0]  (!%p1070_p11), %s1276_s1, 4096, %s1063_s28, [#allocation6], %s980_s15, %s980_s15, %s981_s16  }
  0x28   : > { %s848_s7 = scalar_lea.hbm %s1278_s3, 4096 }
  0x29   : > { %p849_p2 = scmp.ne.s32.totalorder %s1278_s3, %s848_s7  ;;  %p855_p10 = scmp.lt.u32.totalorder %s848_s7, %s1278_s3 }
  0x2b   : > { %p851_p1 = pnand %p849_p2, %p822_p13 }
  0x2d   : > { %p852_p6 = pneg %p851_p1 }
  0x2f   : > { %p857_p3 = pnand %p855_p10, %p852_p6 }
  0x31   : > { %860 = shalt.err (!%p857_p3)
}
  0x32   : > { %s861_s28 = scalar_lea.vmem %s1074_s6, 4096  ;;  %p869_p12 = scmp.lt.s32.totalorder %s1074_s6, %s1074_s6 }
  0x33   : > { %p862_p5 = scmp.ne.s32.totalorder %s1074_s6, %s861_s28  ;;  %p870_p0 = scmp.lt.s32.totalorder %s861_s28, %s861_s28 }
  0x35   : > { %p864_p7 = pnand %p862_p5, %p822_p13  ;;  %p871_p2 = por %p870_p0, %p869_p12 }
  0x37   : > { %p865_p9 = pneg %p864_p7 }
  0x39   : > { %p872_p1 = pnand %p871_p2, %p865_p9 }
  0x3b   : > { %875 = shalt.err (!%p872_p1)
}
  0x3c   : > { %s982_s12 = smov 128   ;;  %s983_s13 = smov 8  }
  0x3d   : > { %764 = dma.hbm_to_vmem [thread:$0]  (!%p1070_p11), %s1278_s3, 4096, %s1074_s6, [#allocation6], %s982_s12, %s982_s12, %s983_s13  }
  0x3e   : > { %s1132_s16 = sadd.s32 1, %s976_s21   ;;  %s29_s23 = sadd.s32 1, %s972_s20 }
  0x3f   : > { %s26_s17 = ssub.s32 %s976_s21, %s1132_s16  ;;  %p36_p6 = scmp.ne.s32.totalorder %s972_s20, %s968_s19 }
  0x40   : > { %p27_p13 = scmp.eq.s32.totalorder %s26_s17, 0  ;;  %p37_p10 = scmp.eq.s32.totalorder %s976_s21, 0 }
  0x41   : > { %p1288_p5 = scmp.eq.s32.totalorder %s1040_s22, 1  ;;  %p775_p9 = scmp.lt.s32.totalorder %s976_s21, 2 }
  0x42   : > { %s1141_s27 = scalar_select %p27_p13, %s972_s20, %s29_s23  }
  0x43   : > { %p38_p3 = por %p37_p10, %p36_p6  ;;  %p1145_p7 = por %p1288_p5, %p36_p6 }
  0x44   : > { %s208_s30 = sand.u32 1, %s972_s20   ;;  %s642_s6 = sshll.u32 %s976_s21, 8 }
  0x45   : > { %s1289_s29 = scalar_select %p1145_p7, 1, 0 }
  0x46   : > { %s628_s7 = sshll.u32 %s208_s30, 4  ;;  %s1155_s10 = scalar_lea.hbm %s1275_s0, %s642_s6 }
  0x47   : > { %s212_s11 = scalar_lea.vmem [#allocation2], %s628_s7  ;;  %p1159_p11 = pnand %p775_p9, %p38_p3 }
  0x48   : > { %s219_s28 = sshll.u32 %s212_s11, 4  ;;  %s1163_s15 = scalar_lea.sflag [#allocation3], %s208_s30  ;;  %s1157_s28 = int_to_ptr.vmem [resolvable:$true] %s219_s28 }
  0x49   : > { %s876_s17 = scalar_lea.hbm %s1155_s10, 256  ;;  %p878_p0 = pneg %p1159_p11 }
  0x4a   : > { %p877_p12 = scmp.ne.s32.totalorder %s1155_s10, %s876_s17  ;;  %s881_s6 = scalar_lea.hbm %s1275_s0, 512 }
  0x4b   : > { %p882_p13 = scmp.lt.u32.totalorder %s1155_s10, %s1275_s0  ;;  %p883_p6 = scmp.lt.u32.totalorder %s881_s6, %s876_s17 }
  0x4c   : > { %p879_p2 = pnand %p878_p0, %p877_p12  ;;  %p885_p3 = scmp.lt.u32.totalorder %s876_s17, %s1155_s10 }
  0x4d   : > { %p884_p10 = por %p883_p6, %p882_p13 }
  0x4e   : > { %p880_p1 = pneg %p879_p2 }
  0x4f   : > { %p886_p5 = por %p885_p3, %p884_p10 }
  0x51   : > { %p887_p9 = pnand %p886_p5, %p880_p1 }
  0x53   : > { %890 = shalt.err (!%p887_p9)
}
  0x54   : > { %s891_s30 = scalar_lea.vmem %s1157_s28, 256  ;;  %s984_s11 = smov [#allocation2]  }
  0x55   : > { %p892_p12 = scmp.ne.s32.totalorder %s1157_s28, %s891_s30  ;;  %s896_s23 = sshll.u32 %s984_s11, 4  ;;  %s897_s23 = int_to_ptr.vmem [resolvable:$false] %s896_s23 }
  0x56   : > { %s898_s7 = scalar_lea.vmem %s897_s23, 512  ;;  %p899_p4 = scmp.lt.s32.totalorder %s1157_s28, %s897_s23 }
  0x57   : > { %p894_p2 = pnand %p892_p12, %p878_p0  ;;  %p900_p13 = scmp.lt.s32.totalorder %s898_s7, %s891_s30 }
  0x59   : > { %p895_p7 = pneg %p894_p2  ;;  %p901_p6 = por %p900_p13, %p899_p4 }
  0x5b   : > { %p902_p10 = pnand %p901_p6, %p895_p7 }
  0x5d   : > { %905 = shalt.err (!%p902_p10)
}
  0x5e   : > { %768 = dma.hbm_to_vmem [thread:$0]  (!%p1159_p11), %s1155_s10, 256, %s1157_s28, %s1163_s15, %s982_s12, %s982_s12, %s983_s13  }
  0x5f   : > { %231 = sbr.rel (%p1059_p8) target bundleno = 595 (0x253), region = 40  ;;  %s1197_s17 = sand.u32 (!%p1059_p8), 1, %s968_s19  }
  0x60   : > { %s632_s6 = sshll.u32 (!%p1059_p8), %s1197_s17, 4  ;;  %s234_s8 = scalar_lea.sflag (!%p1059_p8), [#allocation3], %s1197_s17 }
  0x61   : > { %s1203_s14 = scalar_lea.vmem (!%p1059_p8), [#allocation2], %s632_s6  ;;  %p1291_p4 = scmp.ne.s32.totalorder (!%p1059_p8), %s1284_s24, 0 }
  0x66   : > { %951 = dma.done.wait (%p1291_p4), %s234_s8, 256  }
  0x67   : > { %953 = vsyncadd (%p1291_p4), %s234_s8, 4294967040  ;;  %p1292_p7 = scmp.eq.s32.totalorder %s1040_s22, 0 }
  0x69   : > { %955 = dma.done.wait (%p1292_p7), [#allocation6], 8192   ;;  %p1293_p8 = pmov %p1292_p7 }
  0x6a   : > { %v985_v0 = vmov 0.0   ;;  %v277_v1 = vld [vmem:[#allocation5 + $0x8] sm:$0xff]  ;;  %v279_v2 = vld [vmem:[#allocation5 + $0x18] sm:$0xff]  ;;  %v276_v3 = vld [vmem:[#allocation5] sm:$0xff]  ;;  %s271_s10 = scalar_lea.vmem [#allocation8], %s632_s6  ;;  %s643_s15 = sshll.u32 %s1040_s22, 8 }
  0x6b   : > { %957 = vsyncadd (%p1293_p8), [#allocation6], 4294959104  ;;  %384 = vmatprep.mubr.f32.mxu0 %v985_v0  ;;  %v682_v4 = vpack.c.bf16 %v279_v2, %v277_v1  ;;  %v278_v5 = vld [vmem:[#allocation5 + $0x10] sm:$0xff]  ;;  %v281_v6 = vld [vmem:[#allocation5 + $0x28] sm:$0xff]  ;;  %s531_s28 = sshll.u32 %s271_s10, 4  ;;  %s1231_s11 = scalar_lea.hbm %s1280_s5, %s643_s15  ;;  %s1226_s28 = int_to_ptr.vmem [resolvable:$true] %s531_s28 }
  0x6c   : > { %v283_v7 = vld [vmem:[#allocation5 + $0x38] sm:$0xff]  ;;  %v684_v8 = vpack.c.bf16 %v278_v5, %v276_v3  ;;  %v280_v10 = vld [vmem:[#allocation5 + $0x20] sm:$0xff]  ;;  %v282_v11 = vld [vmem:[#allocation5 + $0x30] sm:$0xff]  ;;  %s518_s23 = scalar_lea.sflag [#allocation4], %s1197_s17  ;;  %s906_s7 = scalar_lea.vmem %s1226_s28, 256 }
  0x6d   : > { %v686_v9 = vpack.c.bf16 %v283_v7, %v281_v6  ;;  %v285_v12 = vld [vmem:[#allocation5 + $0x48] sm:$0xff]  ;;  %683 = vmatprep.subr.bf16.mxu0 %v682_v4  ;;  %v287_v13 = vld [vmem:[#allocation5 + $0x58] sm:$0xff]  ;;  %v688_v14 = vpack.c.bf16 %v282_v11, %v280_v10  ;;  %v284_v16 = vld [vmem:[#allocation5 + $0x40] sm:$0xff]  ;;  %p907_p11 = scmp.ne.s32.totalorder %s1226_s28, %s906_s7  ;;  %p1294_p0 = scmp.ne.s32.totalorder %s1289_s29, 0 }
  0x6e   : > { %685 = vmatpush1.bf16.msra.mxu0 %v684_v8  ;;  %v690_v15 = vpack.c.bf16 %v287_v13, %v285_v12  ;;  %v286_v17 = vld [vmem:[#allocation5 + $0x50] sm:$0xff]  ;;  %v289_v18 = vld [vmem:[#allocation5 + $0x68] sm:$0xff]  ;;  %v291_v19 = vld [vmem:[#allocation5 + $0x78] sm:$0xff]  ;;  %s986_s22 = smov [#allocation8]  }
  0x6f   : > { %687 = vmatprep.subr.bf16.mxu0 %v686_v9  ;;  %v692_v20 = vpack.c.bf16 %v286_v17, %v284_v16  ;;  %v694_v21 = vpack.c.bf16 %v291_v19, %v289_v18  ;;  %v288_v22 = vld [vmem:[#allocation5 + $0x60] sm:$0xff]  ;;  %v290_v23 = vld [vmem:[#allocation5 + $0x70] sm:$0xff]  ;;  %v293_v24 = vld [vmem:[#allocation5 + $0x88] sm:$0xff]  ;;  %p908_p1 = pnand %p907_p11, %p1294_p0  ;;  %s910_s6 = sshll.u32 %s986_s22, 4  ;;  %s911_s6 = int_to_ptr.vmem [resolvable:$false] %s910_s6 }
  0x70   : > { %v295_v25 = vld [vmem:[#allocation5 + $0x98] sm:$0xff]  ;;  %v292_v26 = vld [vmem:[#allocation5 + $0x80] sm:$0xff]  ;;  %v294_v27 = vld [vmem:[#allocation5 + $0x90] sm:$0xff]  ;;  %v696_v30 = vpack.c.bf16 %v290_v23, %v288_v22  ;;  %s912_s8 = scalar_lea.vmem %s911_s6, 512  ;;  %p913_p5 = scmp.lt.s32.totalorder %s1226_s28, %s911_s6 }
  0x71   : > { %v417_v28 = vld [vmem:[#allocation7 + $0x80] sm:$0xff]  ;;  %v418_v29 = vld [vmem:[#allocation7 + $0x88] sm:$0xff]  ;;  %v419_v35 = vld [vmem:[#allocation7 + $0x90] sm:$0xff]  ;;  %v698_v36 = vpack.c.bf16 %v295_v25, %v293_v24  ;;  %v700_v46 = vpack.c.bf16 %v294_v27, %v292_v26  ;;  %p909_p3 = pneg %p908_p1  ;;  %p914_p9 = scmp.lt.s32.totalorder %s912_s8, %s906_s7 }
  0x72   : > { %689 = vmatpush1.bf16.msra.mxu0 %v688_v14  ;;  %v297_v31 = vld [vmem:[#allocation5 + $0xa8] sm:$0xff]  ;;  %v714_v32 = vpack.c.bf16 %v418_v29, %v417_v28  ;;  %v401_v33 = vld [vmem:[#allocation7] sm:$0xff]  ;;  %v420_v38 = vld [vmem:[#allocation7 + $0x98] sm:$0xff] }
  0x73   : > { %691 = vmatprep.subr.bf16.mxu0 %v690_v15  ;;  %v402_v34 = vld [vmem:[#allocation7 + $0x8] sm:$0xff]  ;;  %v403_v39 = vld [vmem:[#allocation7 + $0x10] sm:$0xff]  ;;  %v404_v40 = vld [vmem:[#allocation7 + $0x18] sm:$0xff]  ;;  %v718_v42 = vpack.c.bf16 %v420_v38, %v419_v35  ;;  %p915_p12 = por %p914_p9, %p913_p5 }
  0x74   : > { %v716_v37 = vpack.c.bf16 %v402_v34, %v401_v33  ;;  %v299_v41 = vld [vmem:[#allocation5 + $0xb8] sm:$0xff]  ;;  %715 = vmatprep.subr.bf16.mxu1 %v714_v32  ;;  %v421_v43 = vld [vmem:[#allocation7 + $0xa0] sm:$0xff]  ;;  %v422_v44 = vld [vmem:[#allocation7 + $0xa8] sm:$0xff]  ;;  %v720_v45 = vpack.c.bf16 %v404_v40, %v403_v39 }
  0x75   : > { %v296_v47 = vld [vmem:[#allocation5 + $0xa0] sm:$0xff]  ;;  %v722_v48 = vpack.c.bf16 %v422_v44, %v421_v43  ;;  %v406_v50 = vld [vmem:[#allocation7 + $0x28] sm:$0xff]  ;;  %v702_v51 = vpack.c.bf16 %v299_v41, %v297_v31  ;;  %v298_v52 = vld [vmem:[#allocation5 + $0xb0] sm:$0xff]  ;;  %p916_p2 = pnand %p915_p12, %p909_p3 }
  0x76   : > { %693 = vmatpush1.bf16.msra.mxu0 %v692_v20  ;;  %717 = vmatpush3.bf16.msra.mxu1 %v716_v37  ;;  %v405_v49 = vld [vmem:[#allocation7 + $0x20] sm:$0xff]  ;;  %v423_v53 = vld [vmem:[#allocation7 + $0xb0] sm:$0xff]  ;;  %v424_v54 = vld [vmem:[#allocation7 + $0xb8] sm:$0xff]  ;;  %v704_v58 = vpack.c.bf16 %v298_v52, %v296_v47 }
  0x77   : > { %695 = vmatprep.subr.bf16.mxu0 %v694_v21  ;;  %719 = vmatprep.subr.bf16.mxu1 %v718_v42  ;;  %v301_v55 = vld [vmem:[#allocation5 + $0xc8] sm:$0xff]  ;;  %v303_v56 = vld [vmem:[#allocation5 + $0xd8] sm:$0xff]  ;;  %v724_v57 = vpack.c.bf16 %v406_v50, %v405_v49  ;;  %v300_v59 = vld [vmem:[#allocation5 + $0xc0] sm:$0xff]  ;;  %v726_v60 = vpack.c.bf16 %v424_v54, %v423_v53 }
  0x78   : > { %v407_v61 = vld [vmem:[#allocation7 + $0x30] sm:$0xff]  ;;  %v408_v62 = vld [vmem:[#allocation7 + $0x38] sm:$0xff]  ;;  %v706_v63 = vpack.c.bf16 %v303_v56, %v301_v55  ;;  %v425_v2 = vld [vmem:[#allocation7 + $0xc0] sm:$0xff] }
  0x79   : > { %v302_v1 = vld [vmem:[#allocation5 + $0xd0] sm:$0xff]  ;;  %v426_v3 = vld [vmem:[#allocation7 + $0xc8] sm:$0xff]  ;;  %v307_v5 = vld [vmem:[#allocation5 + $0xf8] sm:$0xff]  ;;  %v728_v6 = vpack.c.bf16 %v408_v62, %v407_v61 }
  0x7a   : > { %697 = vmatpush1.bf16.msra.mxu0 %v696_v30  ;;  %721 = vmatpush3.bf16.msra.mxu1 %v720_v45  ;;  %v305_v4 = vld [vmem:[#allocation5 + $0xe8] sm:$0xff]  ;;  %v708_v7 = vpack.c.bf16 %v302_v1, %v300_v59  ;;  %v304_v8 = vld [vmem:[#allocation5 + $0xe0] sm:$0xff]  ;;  %v730_v9 = vpack.c.bf16 %v426_v3, %v425_v2  ;;  %v306_v13 = vld [vmem:[#allocation5 + $0xf0] sm:$0xff] }
  0x7b   : > { %699 = vmatprep.subr.bf16.mxu0 %v698_v36  ;;  %723 = vmatprep.subr.bf16.mxu1 %v722_v48  ;;  %v409_v10 = vld [vmem:[#allocation7 + $0x40] sm:$0xff]  ;;  %v410_v11 = vld [vmem:[#allocation7 + $0x48] sm:$0xff]  ;;  %v710_v12 = vpack.c.bf16 %v307_v5, %v305_v4  ;;  %v427_v14 = vld [vmem:[#allocation7 + $0xd0] sm:$0xff]  ;;  %v712_v17 = vpack.c.bf16 %v306_v13, %v304_v8  ;;  %v310_v36 = vlaneseq }
  0x7c   : > { %v428_v15 = vld [vmem:[#allocation7 + $0xd8] sm:$0xff]  ;;  %v732_v16 = vpack.c.bf16 %v410_v11, %v409_v10  ;;  %v411_v19 = vld [vmem:[#allocation7 + $0x50] sm:$0xff]  ;;  %v429_v21 = vld [vmem:[#allocation7 + $0xe0] sm:$0xff] }
  0x7d   : > { %v734_v18 = vpack.c.bf16 %v428_v15, %v427_v14  ;;  %v412_v20 = vld [vmem:[#allocation7 + $0x58] sm:$0xff]  ;;  %v430_v22 = vld [vmem:[#allocation7 + $0xe8] sm:$0xff]  ;;  %v274_v24 = vld [vmem:[%s1203_s14] sm:$0xff]  ;;  %v311_v37 = vshrl.u32 %v310_v36, 7 }
  0x7e   : > { %701 = vmatpush1.bf16.msra.mxu0 %v700_v46  ;;  %725 = vmatpush3.bf16.msra.mxu1 %v724_v57  ;;  %v736_v23 = vpack.c.bf16 %v412_v20, %v411_v19  ;;  %v738_v25 = vpack.c.bf16 %v430_v22, %v429_v21  ;;  %v275_v26 = vld [vmem:[%s1203_s14 + $0x8] sm:$0xff]  ;;  %v413_v27 = vld [vmem:[#allocation7 + $0x60] sm:$0xff]  ;;  %v431_v30 = vld [vmem:[#allocation7 + $0xf0] sm:$0xff] }
  0x7f   : > { %703 = vmatprep.subr.bf16.mxu0 %v702_v51  ;;  %727 = vmatprep.subr.bf16.mxu1 %v726_v60  ;;  %v414_v28 = vld [vmem:[#allocation7 + $0x68] sm:$0xff]  ;;  %v432_v31 = vld [vmem:[#allocation7 + $0xf8] sm:$0xff]  ;;  %v415_v33 = vld [vmem:[#allocation7 + $0x70] sm:$0xff]  ;;  %v312_v38 = vsub.s32 0, %v311_v37  ;;  %v316_v39 = vsub.s32 1, %v311_v37 }
  0x80   : > { %v740_v29 = vpack.c.bf16 %v414_v28, %v413_v27  ;;  %v742_v32 = vpack.c.bf16 %v432_v31, %v431_v30  ;;  %v416_v34 = vld [vmem:[#allocation7 + $0x78] sm:$0xff]  ;;  %v636_v55 = vld [vmem:[%s1279_s4] ss:$0 sm:$0xff] }
  0x81   : > { %v744_v35 = vpack.c.bf16 %v416_v34, %v415_v33 }
  0x82   : > { %705 = vmatpush1.bf16.msra.mxu0 %v704_v58  ;;  %729 = vmatpush3.bf16.msra.mxu1 %v728_v6 }
  0x83   : > { %707 = vmatprep.subr.bf16.mxu0 %v706_v63  ;;  %731 = vmatprep.subr.bf16.mxu1 %v730_v9 }
  0x86   : > { %709 = vmatpush1.bf16.msra.mxu0 %v708_v7  ;;  %733 = vmatpush3.bf16.msra.mxu1 %v732_v16 }
  0x87   : > { %711 = vmatprep.subr.bf16.mxu0 %v710_v12  ;;  %735 = vmatprep.subr.bf16.mxu1 %v734_v18 }
  0x8a   : > { %713 = vmatpush1.bf16.msra.mxu0 %v712_v17  ;;  %737 = vmatpush3.bf16.msra.mxu1 %v736_v23 }
  0x8b   : > { %739 = vmatprep.subr.bf16.mxu1 %v738_v25 }
  0x8d   : > { %385 = vmatmul.mubr.f32.vlgmr.msra.gmra.mrb[0].mxu0 %v274_v24 }
  0x8e   : > { %390 = vmatprep.mubr.f32.mxu0 %v985_v0  ;;  %741 = vmatpush3.bf16.msra.mxu1 %v740_v29  ;;  %v308_v0 = vld [vmem:[%s1277_s2] sm:$0x3] }
  0x8f   : > { %743 = vmatprep.subr.bf16.mxu1 %v742_v32  ;;  %v313_v40 = vrot.slane %v308_v0, %v312_v38  ;;  %v317_v41 = vrot.slane %v308_v0, %v316_v39 }
  0x91   : > { %391 = vmatmul.mubr.f32.gmra.mrb[2].mxu0 %v275_v26 }
  0x92   : > { %745 = vmatpush3.bf16.msra.mxu1 %v744_v35 }
 0x160   : > { %v386_v42 = vpop.f32.mrb[0].mxu0 }
 0x161   : > { %v387_v43 = vadd.f32 %v386_v42, %v313_v40  ;;  %v388_v44 = vpop.f32.mrb[1].mxu0 }
 0x162   : > { %v389_v45 = vadd.f32 %v388_v44, %v317_v41 }
 0x163   : > { %v397_v48 = vmax.f32 %v387_v43, 0.0 }
 0x164   : > { %v392_v46 = vpop.f32.mrb[2].mxu0  ;;  %v398_v47 = vmax.f32 %v389_v45, 0.0 }
 0x165   : > { %v393_v49 = vadd.f32 %v392_v46, %v313_v40  ;;  %v394_v50 = vpop.f32.mrb[3].mxu0 }
 0x166   : > { %v395_v51 = vadd.f32 %v394_v50, %v317_v41  ;;  %504 = vmatprep.mubr.f32.mxu1 %v398_v47 }
 0x167   : > { %505 = vmatmul.mubr.f32.vlgmr.msra.gmra.mrb[0].mxu1 %v397_v48  ;;  %v399_v53 = vmax.f32 %v393_v49, 0.0 }
 0x168   : > { %v400_v52 = vmax.f32 %v395_v51, 0.0 }
 0x16a   : > { %509 = vmatprep.mubr.f32.mxu1 %v400_v52 }
 0x16b   : > { %510 = vmatmul.mubr.f32.gmra.mrb[2].mxu1 %v399_v53 }
 0x23a   : > { %v676_v54 = vpop.f32.mrb[0].mxu1 }
 0x23b   : > { %v677_v56 = vpop.f32.mrb[1].mxu1 }
 0x23c   : > { %v678_v57 = vadd.f32 %v677_v56, %v676_v54 }
 0x23e   : > { %v507_v58 = vadd.f32 %v678_v57, %v636_v55  ;;  %v679_v59 = vpop.f32.mrb[2].mxu1 }
 0x23f   : > { %v680_v60 = vpop.f32.mrb[3].mxu1 }
 0x240   : > { %515 = vst [vmem:[%s271_s10] sm:$0xff] %v507_v58  ;;  %v681_v61 = vadd.f32 %v680_v60, %v679_v59 }
 0x242   : > { %v512_v62 = vadd.f32 %v681_v61, %v636_v55 }
 0x244   : > { %516 = vst [vmem:[%s271_s10 + $0x8] sm:$0xff] %v512_v62 }
 0x245   : > { %919 = shalt.err (!%p916_p2)
}
 0x246   : > { %s920_s14 = scalar_lea.hbm %s1231_s11, 256  ;;  %s924_s12 = scalar_lea.hbm %s1280_s5, 512 }
 0x247   : > { %p921_p13 = scmp.ne.s32.totalorder %s1231_s11, %s920_s14  ;;  %p925_p4 = scmp.lt.u32.totalorder %s1231_s11, %s1280_s5 }
 0x248   : > { %p926_p7 = scmp.lt.u32.totalorder %s924_s12, %s920_s14  ;;  %p928_p11 = scmp.lt.u32.totalorder %s920_s14, %s1231_s11 }
 0x249   : > { %p922_p6 = pnand %p921_p13, %p1294_p0 }
 0x24a   : > { %p927_p8 = por %p926_p7, %p925_p4 }
 0x24b   : > { %p923_p10 = pneg %p922_p6 }
 0x24c   : > { %p929_p1 = por %p928_p11, %p927_p8 }
 0x24e   : > { %p930_p3 = pnand %p929_p1, %p923_p10 }
 0x250   : > { %933 = shalt.err (!%p930_p3)
}
 0x251   : > { %s987_s15 = smov 128   ;;  %s988_s9 = smov 8  }
 0x252   : > { %756 = dma.vmem_to_hbm [thread:$0]  (%p1294_p0), %s1226_s28, 256, %s1231_s11, %s518_s23, %s987_s15, %s987_s15, %s988_s9  }
 0x253 PF: > { %s546_s30 = sand.u32 1, %s964_s18   ;;  %p1295_p5 = scmp.ne.s32.totalorder %s1285_s25, 0 }
 0x254   : > { %p1296_p9 = scmp.ge.s32.totalorder %s976_s21, 2  ;;  %s547_s7 = scalar_lea.sflag [#allocation4], %s546_s30 }
 0x256   : > { %p770_p12 = pnand %p1296_p9, %p1295_p5 }
 0x258   : > { %959 = dma.done.wait (!%p770_p12), %s547_s7, 256  }
 0x259   : > { %961 = vsyncadd (!%p770_p12), %s547_s7, 4294967040  ;;  %p19_p2 = scmp.ge.s32.totalorder %s1132_s16, 4   ;;  %s1297_s18 = smov %s968_s19 }
 0x25a   : > { %s1298_s19 = smov %s972_s20  ;;  %s1299_s20 = smov %s1141_s27 }
 0x25b   : > { %s1300_s21 = smov %s1132_s16  ;;  %21 = sbr.rel (!%p19_p2) target bundleno = 6 (0x6), region = 93 }
 0x262   :  { %552 = vsyncpa [#allocation3], 1 }
 0x263   :  { %554 = vsyncpa [#allocation3 + $0x1], 1 }
 0x264   :  { %555 = vsyncpa [#allocation6], 1 }
 0x265   :  { %556 = vsyncpa [#allocation4], 1 }
 0x266   :  { %558 = vsyncpa [#allocation4 + $0x1], 1 }

</bundles_post_ra>
